<compile_context>
chip_gen: v7x
topology: tpu7x:2x2x1
jax: 0.10.0
libtpu: 0.0.40
codegen_flags: <defaults>
</compile_context>

<pallas_src>
import math
import functools

import jax
import jax.numpy as jnp
from jax.experimental import pallas as pl
from jax.experimental.pallas import tpu as pltpu

DEPTH = 6
_BN_EPS = 1e-5

MAX_TM = 512          # M tile cap (rows = N*H*W)
MAX_TN = 512          # N tile cap (output channels)
MAX_TK_SINGLE = 2560  # if padded K fits here, use a single K block
TK_MULTI = 2048       # otherwise aim for roughly this K tile width
VMEM_LIMIT = 48 * 1024 * 1024


def _round_up(x, m):
    return (x + m - 1) // m * m


def _tiles_kn(K, N):
    """Tiling along K (contraction) and N (out channels); independent of M."""
    TN = _round_up(N, 128) if N <= MAX_TN else MAX_TN
    Np = _round_up(N, TN)
    Kp0 = _round_up(K, 128)
    if Kp0 <= MAX_TK_SINGLE:
        TK, Kp = Kp0, Kp0
    else:
        nsteps = -(-Kp0 // TK_MULTI)
        TK = _round_up(-(-Kp0 // nsteps), 128)
        Kp = TK * nsteps
    return TN, TK, Kp, Np


def _tile_m(M):
    """Row tiling. Rounded to 16 (bf16 sublane packing)."""
    TM = _round_up(M, 16) if M <= MAX_TM else MAX_TM
    Mp = _round_up(M, TM)
    return TM, Mp


# ----------------------------------------------------------------------------
# Pallas kernels
# ----------------------------------------------------------------------------
def mm_kernel(*refs, activation, has_residual):
    """o = act(A @ B + bias [+ residual]); bf16 in/out, f32 VMEM accumulator.
    BN scale is pre-folded into B's columns at build time."""
    if has_residual:
        a_ref, b_ref, c_ref, r_ref, o_ref, acc_ref = refs
    else:
        a_ref, b_ref, c_ref, o_ref, acc_ref = refs

    @pl.when(pl.program_id(2) == 0)
    def _init():
        acc_ref[...] = jnp.zeros_like(acc_ref)

    acc_ref[...] += jnp.dot(a_ref[...], b_ref[...],
                            preferred_element_type=jnp.float32)

    @pl.when(pl.program_id(2) == pl.num_programs(2) - 1)
    def _fin():
        r = acc_ref[...] + c_ref[...]
        if has_residual:
            r = r + r_ref[...].astype(jnp.float32)
        if activation == "relu":
            r = jnp.maximum(r, 0.0)
        elif activation == "sigmoid":
            r = jax.nn.sigmoid(r)
        o_ref[...] = r.astype(o_ref.dtype)


def maxpool_kernel(*refs):
    """Elementwise max of the 9 shifted 3x3 taps (each a separate input)."""
    o_ref = refs[-1]
    m = refs[0][...]
    for r in refs[1:9]:
        m = jnp.maximum(m, r[...])
    o_ref[...] = m


def tail_kernel(x_ref, w_ref, b_ref, o_ref):
    """One 64->128 matmul: lanes 0:32 = out(x) (no activation), lane 32 =
    sigmoid of the pre-composed conv8@conv9@conv10 chain, rest zero."""
    y = jnp.dot(x_ref[...], w_ref[...],
                preferred_element_type=jnp.float32) + b_ref[...]
    col = jax.lax.broadcasted_iota(jnp.int32, y.shape, 1)
    o_ref[...] = jnp.where(col == 32, jax.nn.sigmoid(y), y)


# ----------------------------------------------------------------------------
# Pallas wrappers
# ----------------------------------------------------------------------------
def _matmul_prepped(A, Bp, biasp, residual, *, M, K, N, Kp, Np, TK, TN,
                    activation):
    """A:(M,K) bf16, Bp:(Kp,Np) bf16 pre-padded, biasp:(1,Np) f32 pre-padded.
    Returns bf16 (M,N) (padded shape returned directly when already aligned)."""
    TM, Mp = _tile_m(M)
    if A.dtype != jnp.bfloat16:
        A = A.astype(jnp.bfloat16)
    Ap = jnp.pad(A, ((0, Mp - M), (0, Kp - K)))

    has_residual = residual is not None
    in_specs = [
        pl.BlockSpec((TM, TK), lambda i, j, k: (i, k)),
        pl.BlockSpec((TK, TN), lambda i, j, k: (k, j)),
        pl.BlockSpec((1, TN), lambda i, j, k: (0, j)),
    ]
    args = [Ap, Bp, biasp]
    if has_residual:
        Rp = jnp.pad(residual.astype(jnp.bfloat16),
                     ((0, Mp - M), (0, Np - N)))
        in_specs.append(pl.BlockSpec((TM, TN), lambda i, j, k: (i, j)))
        args.append(Rp)

    out = pl.pallas_call(
        functools.partial(mm_kernel, activation=activation,
                          has_residual=has_residual),
        out_shape=jax.ShapeDtypeStruct((Mp, Np), jnp.bfloat16),
        grid_spec=pltpu.PrefetchScalarGridSpec(
            num_scalar_prefetch=0,
            grid=(Mp // TM, Np // TN, Kp // TK),
            in_specs=in_specs,
            out_specs=pl.BlockSpec((TM, TN), lambda i, j, k: (i, j)),
            scratch_shapes=[pltpu.VMEM((TM, TN), jnp.float32)],
        ),
        compiler_params=pltpu.CompilerParams(
            dimension_semantics=("parallel", "parallel", "arbitrary"),
            vmem_limit_bytes=VMEM_LIMIT),
    )(*args)
    if Mp == M and Np == N:
        return out
    return out[:M, :N]


@functools.partial(jax.jit,
                   static_argnames=("meta", "stride", "pad", "activation"))
def _conv2d_impl(x, Bp, biasp, residual, *, meta, stride, pad, activation):
    """x: NHWC bf16.  Prepped weights: BN-folded, padded, bf16."""
    kh, kw, Cin, K, N, Kp, Np, TK, TN = meta
    Nb, H, W, C = x.shape
    assert C == Cin
    xp = jnp.pad(x, ((0, 0), (pad, pad), (pad, pad), (0, 0))) if pad else x
    Ho = (H + 2 * pad - kh) // stride + 1
    Wo = (W + 2 * pad - kw) // stride + 1
    cols = []
    for i in range(kh):
        for j in range(kw):
            cols.append(xp[:, i:i + stride * Ho:stride,
                           j:j + stride * Wo:stride, :])
    patches = cols[0] if len(cols) == 1 else jnp.concatenate(cols, axis=-1)
    A = patches.reshape(Nb * Ho * Wo, K)
    rf = None if residual is None else residual.reshape(Nb * Ho * Wo, N)
    out = _matmul_prepped(A, Bp, biasp, rf, M=Nb * Ho * Wo, K=K, N=N,
                          Kp=Kp, Np=Np, TK=TK, TN=TN, activation=activation)
    return out.reshape(Nb, Ho, Wo, N)


def conv2d(x, cp, residual=None, *, stride, pad, activation):
    return _conv2d_impl(x, cp["B"], cp["bias"], residual, meta=cp["meta"],
                        stride=stride, pad=pad, activation=activation)


@functools.partial(jax.jit, static_argnames=("meta",))
def _convT_impl(x, Bp, biasp, *, meta):
    """ConvTranspose2d(kernel=2, stride=2) as a single fused matmul."""
    Cin, Cout, Kp, Np, TK, TN = meta
    Nb, H, W, C = x.shape
    assert C == Cin
    xf = x.reshape(Nb * H * W, Cin)
    y = _matmul_prepped(xf, Bp, biasp, None, M=Nb * H * W, K=Cin, N=4 * Cout,
                        Kp=Kp, Np=Np, TK=TK, TN=TN, activation="none")
    y = y.reshape(Nb, H, W, 2, 2, Cout)
    y = jnp.transpose(y, (0, 1, 3, 2, 4, 5))       # (N,H,di,W,dj,C)
    return y.reshape(Nb, 2 * H, 2 * W, Cout)


def conv_transpose_2x2(x, ct):
    return _convT_impl(x, ct["B"], ct["bias"], meta=ct["meta"])


@jax.jit
def maxpool_3x3_s2(x):
    """MaxPool2d(kernel_size=3, stride=2, padding=1) on NHWC bf16.
    Nine shifted views are passed as nine inputs (no 9x stacked HBM tensor),
    regrouped to 128-lane-dense rows when possible."""
    Nb, H, W, C = x.shape
    Ho = (H + 2 - 3) // 2 + 1
    Wo = (W + 2 - 3) // 2 + 1
    M = Nb * Ho * Wo
    xp = jnp.pad(x, ((0, 0), (1, 1), (1, 1), (0, 0)),
                 constant_values=-jnp.inf)
    views = [xp[:, i:i + 2 * Ho:2, j:j + 2 * Wo:2, :].reshape(M, C)
             for i in range(3) for j in range(3)]
    if (M * C) % 128 == 0 and C <= 128:
        rows, lanes = (M * C) // 128, 128
    else:
        rows, lanes = M, C
    views = [v.reshape(rows, lanes) for v in views]
    TM, Mp = _tile_m(rows)
    if Mp != rows:
        views = [jnp.pad(v, ((0, Mp - rows), (0, 0)),
                         constant_values=-jnp.inf) for v in views]
    spec = pl.BlockSpec((TM, lanes), lambda i: (i, 0))
    out = pl.pallas_call(
        maxpool_kernel,
        out_shape=jax.ShapeDtypeStruct((Mp, lanes), x.dtype),
        grid_spec=pltpu.PrefetchScalarGridSpec(
            num_scalar_prefetch=0,
            grid=(Mp // TM,),
            in_specs=[spec] * 9,
            out_specs=pl.BlockSpec((TM, lanes), lambda i: (i, 0)),
        ),
        compiler_params=pltpu.CompilerParams(
            dimension_semantics=("parallel",)),
    )(*views)
    if Mp != rows:
        out = out[:rows]
    return out.reshape(Nb, Ho, Wo, C)


@jax.jit
def tail_convs(x, Wall, ball):
    """Fused out(64->32) + pre-composed conv8@conv9@conv10 (+sigmoid) as one
    lane-dense (64->128) matmul.  Returns (x_out f32, x3 f32)."""
    Nb, H, W, C = x.shape   # C == 64
    M = Nb * H * W
    TM, Mp = _tile_m(M)
    xf = x.reshape(M, C)
    if Mp != M:
        xf = jnp.pad(xf, ((0, Mp - M), (0, 0)))
    out = pl.pallas_call(
        tail_kernel,
        out_shape=jax.ShapeDtypeStruct((Mp, 128), jnp.float32),
        grid_spec=pltpu.PrefetchScalarGridSpec(
            num_scalar_prefetch=0,
            grid=(Mp // TM,),
            in_specs=[pl.BlockSpec((TM, C), lambda i: (i, 0)),
                      pl.BlockSpec((C, 128), lambda i: (0, 0)),
                      pl.BlockSpec((1, 128), lambda i: (0, 0))],
            out_specs=pl.BlockSpec((TM, 128), lambda i: (i, 0)),
        ),
        compiler_params=pltpu.CompilerParams(
            dimension_semantics=("parallel",)),
    )(xf, Wall, ball)
    out = out[:M]
    x_out = out[:, :32].reshape(Nb, H, W, 32)
    x3 = out[:, 32:33].reshape(Nb, H, W, 1)
    return x_out, x3


# ----------------------------------------------------------------------------
# Parameters: PyTorch-default-style random init, pre-transformed to matmul
# layout (BN folded, bf16, padded) once at build time.
# ----------------------------------------------------------------------------
def bn_fold(c):
    """Eval-mode BatchNorm with fresh init (gamma=1, beta=0, mean=0, var=1)."""
    s = jnp.full((c,), 1.0 / math.sqrt(1.0 + _BN_EPS), jnp.float32)
    sh = jnp.zeros((c,), jnp.float32)
    return s, sh


def prep_conv(w, b, with_bn):
    """w: torch layout (Cout, Cin, kh, kw). Returns matmul-ready dict."""
    Cout, Cin, kh, kw = w.shape
    K, N = kh * kw * Cin, Cout
    Bm = jnp.transpose(w, (2, 3, 1, 0)).reshape(K, N)
    eff_b = jnp.zeros((N,), jnp.float32) if b is None else b.astype(jnp.float32)
    if with_bn:
        s, sh = bn_fold(N)
        Bm = Bm * s[None, :]          # fold BN scale into the weight columns
        eff_b = eff_b * s + sh
    TN, TK, Kp, Np = _tiles_kn(K, N)
    Bp = jnp.pad(Bm, ((0, Kp - K), (0, Np - N))).astype(jnp.bfloat16)
    bp = jnp.pad(eff_b.reshape(1, N), ((0, 0), (0, Np - N))).astype(jnp.float32)
    return {"B": Bp, "bias": bp,
            "meta": (kh, kw, Cin, K, N, Kp, Np, TK, TN)}


def prep_convT(w, b):
    """w: torch layout (Cin, Cout, 2, 2) -> (Cin, 4*Cout) matmul weight."""
    Cin, Cout = w.shape[0], w.shape[1]
    Bm = jnp.transpose(w, (0, 2, 3, 1)).reshape(Cin, 4 * Cout)
    bias = jnp.tile(b.astype(jnp.float32), 4)
    K, N = Cin, 4 * Cout
    TN, TK, Kp, Np = _tiles_kn(K, N)
    Bp = jnp.pad(Bm, ((0, Kp - K), (0, Np - N))).astype(jnp.bfloat16)
    bp = jnp.pad(bias.reshape(1, N), ((0, 0), (0, Np - N))).astype(jnp.float32)
    return {"B": Bp, "bias": bp, "meta": (Cin, Cout, Kp, Np, TK, TN)}


class ParamGen:
    def __init__(self, seed=0):
        self._key = jax.random.PRNGKey(seed)

    def _next(self):
        self._key, k = jax.random.split(self._key)
        return k

    def conv(self, cout, cin, kh, kw, bias=True):
        bound = 1.0 / math.sqrt(cin * kh * kw)
        w = jax.random.uniform(self._next(), (cout, cin, kh, kw),
                               jnp.float32, -bound, bound)
        b = (jax.random.uniform(self._next(), (cout,), jnp.float32,
                                -bound, bound) if bias else None)
        return w, b

    def convT(self, cin, cout, kh, kw):
        bound = 1.0 / math.sqrt(cout * kh * kw)
        w = jax.random.uniform(self._next(), (cin, cout, kh, kw),
                               jnp.float32, -bound, bound)
        b = jax.random.uniform(self._next(), (cout,), jnp.float32,
                               -bound, bound)
        return w, b


def build_params():
    pg = ParamGen(0)
    P = {}
    # resnet101 stem: conv1 7x7 s2 (no bias) + BN
    w, _ = pg.conv(64, 3, 7, 7, bias=False)
    P["conv1"] = prep_conv(w, None, with_bn=True)
    # resnet101 layers: (planes, blocks, stride)
    cfg = [(64, 3, 1), (128, 4, 2), (256, 23, 2), (512, 3, 2)]
    inplanes = 64
    layers = []
    for planes, nblocks, stride in cfg:
        blist = []
        for bi in range(nblocks):
            s = stride if bi == 0 else 1
            bp = {"stride": s}
            w1, _ = pg.conv(planes, inplanes, 1, 1, bias=False)
            w2, _ = pg.conv(planes, planes, 3, 3, bias=False)
            w3, _ = pg.conv(planes * 4, planes, 1, 1, bias=False)
            bp["c1"] = prep_conv(w1, None, with_bn=True)
            bp["c2"] = prep_conv(w2, None, with_bn=True)
            bp["c3"] = prep_conv(w3, None, with_bn=True)
            if s != 1 or inplanes != planes * 4:
                wd, _ = pg.conv(planes * 4, inplanes, 1, 1, bias=False)
                bp["cd"] = prep_conv(wd, None, with_bn=True)
            blist.append(bp)
            inplanes = planes * 4
        layers.append(blist)
    P["layers"] = layers
    # bridge: two ConvBlock(2048, 2048) (conv bias + BN)
    bw1, bb1 = pg.conv(2048, 2048, 3, 3)
    bw2, bb2 = pg.conv(2048, 2048, 3, 3)
    P["bridge"] = [prep_conv(bw1, bb1, with_bn=True),
                   prep_conv(bw2, bb2, with_bn=True)]
    # up blocks: (in_ch_after_cat, out_ch, upconv_in, upconv_out)
    up_cfg = [(2048, 1024, 2048, 1024), (1024, 512, 1024, 512),
              (512, 256, 512, 256), (192, 128, 256, 128), (67, 64, 128, 64)]
    ups = []
    for in_ch, out_ch, uci, uco in up_cfg:
        u = {}
        wt, bt = pg.convT(uci, uco, 2, 2)
        u["ct"] = prep_convT(wt, bt)
        w1, b1 = pg.conv(out_ch, in_ch, 3, 3)
        w2, b2 = pg.conv(out_ch, out_ch, 3, 3)
        u["c1"] = prep_conv(w1, b1, with_bn=True)
        u["c2"] = prep_conv(w2, b2, with_bn=True)
        ups.append(u)
    P["ups"] = ups
    # tail: out(64->32), conv8(32->8), conv9(8->4), conv10(4->1)+sigmoid.
    # No nonlinearity between them -> pre-compose conv8..conv10 into one
    # 32->1 affine and pack with `out` into a single (64,128) weight.
    ow, ob = pg.conv(32, 64, 1, 1)
    w8, b8 = pg.conv(8, 32, 1, 1)
    w9, b9 = pg.conv(4, 8, 1, 1)
    w10, b10 = pg.conv(1, 4, 1, 1)
    Wout = ow.reshape(32, 64).T                 # (64, 32)
    W8m, W9m, W10m = w8.reshape(8, 32).T, w9.reshape(4, 8).T, w10.reshape(1, 4).T
    Wchain = W8m @ W9m @ W10m                   # (32, 1)
    bchain = b8 @ W9m @ W10m + b9 @ W10m + b10  # (1,)
    Wfull = Wout @ Wchain                       # (64, 1) composed 64->1 weight
    bfull = ob @ Wchain + bchain                # (1,)
    Wall = jnp.zeros((64, 128), jnp.float32)
    Wall = Wall.at[:, :32].set(Wout).at[:, 32:33].set(Wfull)
    ball = jnp.zeros((1, 128), jnp.float32)
    ball = ball.at[0, :32].set(ob).at[0, 32].set(bfull[0])
    P["tail_W"] = Wall.astype(jnp.bfloat16)
    P["tail_b"] = ball
    return P


# ----------------------------------------------------------------------------
# Model forward
# ----------------------------------------------------------------------------
def bottleneck(x, bp):
    out = conv2d(x, bp["c1"], stride=1, pad=0, activation="relu")
    out = conv2d(out, bp["c2"], stride=bp["stride"], pad=1, activation="relu")
    if "cd" in bp:
        identity = conv2d(x, bp["cd"], stride=bp["stride"], pad=0,
                          activation="none")
    else:
        identity = x
    # conv3 + BN3 + residual add + ReLU, fused into one matmul epilogue.
    return conv2d(out, bp["c3"], identity, stride=1, pad=0, activation="relu")


def up_block(up_x, down_x, u):
    x = conv_transpose_2x2(up_x, u["ct"])
    x = jnp.concatenate([x, down_x], axis=-1)       # bf16 concat
    x = conv2d(x, u["c1"], stride=1, pad=1, activation="relu")
    x = conv2d(x, u["c2"], stride=1, pad=1, activation="relu")
    return x


def unet_forward(x_nchw, P):
    x = jnp.transpose(x_nchw, (0, 2, 3, 1)).astype(jnp.bfloat16)  # NCHW->NHWC
    pre = {"layer_0": x}
    # input_block: conv1 7x7/s2 + BN + ReLU
    x = conv2d(x, P["conv1"], stride=2, pad=3, activation="relu")
    pre["layer_1"] = x
    # input_pool
    x = maxpool_3x3_s2(x)
    # down blocks (resnet101 layer1..layer4)
    for li, blist in enumerate(P["layers"], start=2):
        for bp in blist:
            x = bottleneck(x, bp)
        if li == DEPTH - 1:
            continue
        pre[f"layer_{li}"] = x
    # bridge
    x = conv2d(x, P["bridge"][0], stride=1, pad=1, activation="relu")
    x = conv2d(x, P["bridge"][1], stride=1, pad=1, activation="relu")
    # TODO(synk): torch's per-sample copy into torch.ones via
    # reshape(2048,49)->reshape(2048,7,7) is a value no-op; omitted.
    # up blocks
    for i, u in enumerate(P["ups"], start=1):
        x = up_block(x, pre[f"layer_{DEPTH - 1 - i}"], u)
    # fused tail: out(64->32) + composed conv8..conv10 + sigmoid
    x_out, x3 = tail_convs(x, P["tail_W"], P["tail_b"])
    # back to NCHW to match the PyTorch return convention
    return jnp.transpose(x_out, (0, 3, 1, 2)), jnp.transpose(x3, (0, 3, 1, 2))


if __name__ == "__main__":
    key = jax.random.PRNGKey(0)
    # Small demo resolution (any multiple of 32 works; 224x224 is what the
    # omitted reshape no-op implies, but 32x32 keeps the synthetic run fast).
    x = jax.random.normal(key, (1, 3, 32, 32), jnp.float32)
    params = build_params()
    y, y3 = unet_forward(x, params)
    jax.block_until_ready((y, y3))
    assert y.shape == (1, 32, 32, 32), y.shape
    assert y3.shape == (1, 1, 32, 32), y3.shape
    assert bool(jnp.all(jnp.isfinite(y))) and bool(jnp.all(jnp.isfinite(y3)))
    print("KERNEL_OK")
</pallas_src>

<mosaic_0001>
module attributes {stable_mosaic.version = 11 : i64} {
  func.func @mm_kernel(%arg0: i32, %arg1: i32, %arg2: i32, %arg3: memref<256x256xbf16, #tpu.memory_space<vmem>>, %arg4: memref<256x128xbf16, #tpu.memory_space<vmem>>, %arg5: memref<1x128xf32, #tpu.memory_space<vmem>>, %arg6: memref<256x128xbf16, #tpu.memory_space<vmem>>, %arg7: memref<256x128xf32, #tpu.memory_space<vmem>>) attributes {dimension_semantics = [#tpu.dimension_semantics<parallel>, #tpu.dimension_semantics<parallel>, #tpu.dimension_semantics<arbitrary>], iteration_bounds = array<i64: 1, 1, 1>, scalar_prefetch = 0 : i64, scratch_operands = 1 : i64, tpu.core_type = #tpu.core_type<tc>, window_params = [{transform_indices = @transform_0, window_bounds = array<i64: 256, 256>}, {transform_indices = @transform_1, window_bounds = array<i64: 256, 128>}, {transform_indices = @transform_2, window_bounds = array<i64: 1, 128>}, {transform_indices = @transform_3, window_bounds = array<i64: 256, 128>}]} {
    %c0_i32 = arith.constant 0 : i32
    %0 = arith.cmpi eq, %arg2, %c0_i32 : i32
    %1 = arith.extui %0 : i1 to i32
    %c0_i32_0 = arith.constant 0 : i32
    %2 = arith.cmpi ne, %1, %c0_i32_0 : i32
    scf.if %2 {
      %cst_10 = arith.constant 0.000000e+00 : f32
      %12 = vector.broadcast %cst_10 : f32 to vector<256x128xf32>
      %c0_11 = arith.constant 0 : index
      %c0_12 = arith.constant 0 : index
      %13 = vector.load %arg7[%c0_11, %c0_12] : memref<256x128xf32, #tpu.memory_space<vmem>>, vector<256x128xf32>
      tpu.vector_store %arg7[%c0_11, %c0_12], %12 {strides = array<i32>} : memref<256x128xf32, #tpu.memory_space<vmem>>, vector<256x128xf32>,
    } else {
    }
    %c0 = arith.constant 0 : index
    %c0_1 = arith.constant 0 : index
    %3 = vector.load %arg7[%c0, %c0_1] : memref<256x128xf32, #tpu.memory_space<vmem>>, vector<256x128xf32>
    %c0_2 = arith.constant 0 : index
    %c0_3 = arith.constant 0 : index
    %4 = vector.load %arg3[%c0_2, %c0_3] : memref<256x256xbf16, #tpu.memory_space<vmem>>, vector<256x256xbf16>
    %c0_4 = arith.constant 0 : index
    %c0_5 = arith.constant 0 : index
    %5 = vector.load %arg4[%c0_4, %c0_5] : memref<256x128xbf16, #tpu.memory_space<vmem>>, vector<256x128xbf16>
    %cst = arith.constant dense<0.000000e+00> : vector<256x128xf32>
    %6 = tpu.matmul %4, %5, %cst {dimension_numbers = #tpu.dot_dimension_numbers<[1], [0], [0], [1], [0, 0, 1, 1], [], []>} : vector<256x256xbf16>, vector<256x128xbf16>, vector<256x128xf32> -> vector<256x128xf32>
    %7 = arith.addf %3, %6 : vector<256x128xf32>
    %c0_6 = arith.constant 0 : index
    %c0_7 = arith.constant 0 : index
    %8 = vector.load %arg7[%c0_6, %c0_7] : memref<256x128xf32, #tpu.memory_space<vmem>>, vector<256x128xf32>
    tpu.vector_store %arg7[%c0_6, %c0_7], %7 {strides = array<i32>} : memref<256x128xf32, #tpu.memory_space<vmem>>, vector<256x128xf32>,
    %c0_i32_8 = arith.constant 0 : i32
    %9 = arith.cmpi eq, %arg2, %c0_i32_8 : i32
    %10 = arith.extui %9 : i1 to i32
    %c0_i32_9 = arith.constant 0 : i32
    %11 = arith.cmpi ne, %10, %c0_i32_9 : i32
    scf.if %11 {
      %c0_10 = arith.constant 0 : index
      %c0_11 = arith.constant 0 : index
      %12 = vector.load %arg7[%c0_10, %c0_11] : memref<256x128xf32, #tpu.memory_space<vmem>>, vector<256x128xf32>
      %c0_12 = arith.constant 0 : index
      %c0_13 = arith.constant 0 : index
      %13 = vector.load %arg5[%c0_12, %c0_13] : memref<1x128xf32, #tpu.memory_space<vmem>>, vector<1x128xf32>
      %14 = vector.broadcast %13 : vector<1x128xf32> to vector<256x128xf32>
      %15 = arith.addf %12, %14 : vector<256x128xf32>
      %cst_14 = arith.constant 0.000000e+00 : f32
      %16 = vector.broadcast %cst_14 : f32 to vector<256x128xf32>
      %17 = arith.maximumf %15, %16 : vector<256x128xf32>
      %18 = arith.truncf %17 : vector<256x128xf32> to vector<256x128xbf16>
      %c0_15 = arith.constant 0 : index
      %c0_16 = arith.constant 0 : index
      %19 = vector.load %arg6[%c0_15, %c0_16] : memref<256x128xbf16, #tpu.memory_space<vmem>>, vector<256x128xbf16>
      tpu.vector_store %arg6[%c0_15, %c0_16], %18 {strides = array<i32>} : memref<256x128xbf16, #tpu.memory_space<vmem>>, vector<256x128xbf16>,
    } else {
    }
    return
  }
  func.func @transform_0(%arg0: i32, %arg1: i32, %arg2: i32) -> (i32, i32) {
    %c0_i32 = arith.constant 0 : i32
    return %arg0, %arg2 : i32, i32
  }
  func.func @transform_1(%arg0: i32, %arg1: i32, %arg2: i32) -> (i32, i32) {
    %c0_i32 = arith.constant 0 : i32
    return %arg2, %arg1 : i32, i32
  }
  func.func @transform_2(%arg0: i32, %arg1: i32, %arg2: i32) -> (i32, i32) {
    %c0_i32 = arith.constant 0 : i32
    %c0_i32_0 = arith.constant 0 : i32
    return %c0_i32, %arg1 : i32, i32
  }
  func.func @transform_3(%arg0: i32, %arg1: i32, %arg2: i32) -> (i32, i32) {
    %c0_i32 = arith.constant 0 : i32
    return %arg0, %arg1 : i32, i32
  }
}

</mosaic_0001>

<bundles_post_ra>
// kernel: _conv2d_impl.1
= control target key start
LH: loop header
LB: loop body
LE: loop exit
PB: predicated region body
PF: predicated region fallthrough
CT: control target
= control target key end

     0   :  { %s1554_s0 = inlined_call_operand.vmem [shape: bf16[256,256], index: 0, kind: input, shape index: {}]   ;;  %s1555_s1 = inlined_call_operand.vmem [shape: bf16[256,128], index: 1, kind: input, shape index: {}]   ;;  %s1556_s2 = inlined_call_operand.vmem [shape: f32[1,128], index: 2, kind: input, shape index: {}]   ;;  %s1557_s3 = inlined_call_operand.hbm [shape: bf16[256,128], index: 3, kind: output, shape index: {}]  }
   0x1   :  { %v1250_v0 = vld [vmem:[%s1555_s1 + $0x40] sm:$0xff]   ;;  %v1252_v2 = vld [vmem:[%s1555_s1 + $0x48] sm:$0xff]   ;;  %v1254_v4 = vld [vmem:[%s1555_s1 + $0x50] sm:$0xff]  }
   0x2   :  { %v1251_v1 = vld [vmem:[%s1555_s1] sm:$0xff]   ;;  %1119 = vmatprep.subr.bf16.mxu0 %v1250_v0  ;;  %1231 = vmatprep.subr.bf16.mxu1 %v1250_v0  ;;  %v1253_v3 = vld [vmem:[%s1555_s1 + $0x8] sm:$0xff]   ;;  %v1255_v5 = vld [vmem:[%s1555_s1 + $0x10] sm:$0xff]  }
   0x3   :  { %1120 = vmatpush3.bf16.msra.mxu0 %v1251_v1  ;;  %1239 = vmatpush3.bf16.msra.mxu1 %v1251_v1  ;;  %v1256_v6 = vld [vmem:[%s1555_s1 + $0x58] sm:$0xff]   ;;  %v1258_v8 = vld [vmem:[%s1555_s1 + $0x60] sm:$0xff]   ;;  %v1260_v10 = vld [vmem:[%s1555_s1 + $0x68] sm:$0xff]  }
   0x4   :  { %1121 = vmatprep.subr.bf16.mxu0 %v1252_v2  ;;  %1232 = vmatprep.subr.bf16.mxu1 %v1252_v2  ;;  %v1257_v7 = vld [vmem:[%s1555_s1 + $0x18] sm:$0xff]   ;;  %v1259_v9 = vld [vmem:[%s1555_s1 + $0x20] sm:$0xff]   ;;  %v1261_v13 = vld [vmem:[%s1555_s1 + $0x28] sm:$0xff]  }
   0x5   :  { %v1268_v11 = vld [vmem:[%s1554_s0 + $0x4] ss:$8 sps:$4 sm:$0xff]   ;;  %v1262_v14 = vld [vmem:[%s1555_s1 + $0x70] sm:$0xff]   ;;  %v1264_v16 = vld [vmem:[%s1555_s1 + $0x78] sm:$0xff]  }
   0x6   :  { %v1271_v12 = vld [vmem:[%s1554_s0 + $0x84] ss:$8 sps:$4 sm:$0xff]   ;;  %436 = vmatprep.mubr.bf16.mxu0 %v1268_v11  ;;  %v1263_v15 = vld [vmem:[%s1555_s1 + $0x30] sm:$0xff]   ;;  %v1265_v17 = vld [vmem:[%s1555_s1 + $0x38] sm:$0xff]  }
   0x7   :  { %1122 = vmatpush3.bf16.msra.mxu0 %v1253_v3  ;;  %1240 = vmatpush3.bf16.msra.mxu1 %v1253_v3  ;;  %v1266_v18 = vld [vmem:[%s1554_s0] ss:$8 sps:$4 sm:$0xff]   ;;  %v1272_v20 = vld [vmem:[%s1554_s0 + $0x14] ss:$8 sps:$4 sm:$0xff]  }
   0x8   :  { %1123 = vmatprep.subr.bf16.mxu0 %v1254_v4  ;;  %1233 = vmatprep.subr.bf16.mxu1 %v1254_v4  ;;  %v1269_v19 = vld [vmem:[%s1554_s0 + $0x80] ss:$8 sps:$4 sm:$0xff]   ;;  %v1274_v21 = vld [vmem:[%s1554_s0 + $0x94] ss:$8 sps:$4 sm:$0xff]  }
   0x9   :  { %500 = vmatprep.mubr.bf16.mxu1 %v1271_v12 }
   0xb   :  { %1124 = vmatpush3.bf16.msra.mxu0 %v1255_v5  ;;  %1241 = vmatpush3.bf16.msra.mxu1 %v1255_v5 }
   0xc   :  { %1125 = vmatprep.subr.bf16.mxu0 %v1256_v6  ;;  %1234 = vmatprep.subr.bf16.mxu1 %v1256_v6 }
   0xf   :  { %1126 = vmatpush3.bf16.msra.mxu0 %v1257_v7  ;;  %1242 = vmatpush3.bf16.msra.mxu1 %v1257_v7 }
  0x10   :  { %1127 = vmatprep.subr.bf16.mxu0 %v1258_v8  ;;  %1235 = vmatprep.subr.bf16.mxu1 %v1258_v8 }
  0x13   :  { %1128 = vmatpush3.bf16.msra.mxu0 %v1259_v9  ;;  %1243 = vmatpush3.bf16.msra.mxu1 %v1259_v9 }
  0x14   :  { %1129 = vmatprep.subr.bf16.mxu0 %v1260_v10  ;;  %1236 = vmatprep.subr.bf16.mxu1 %v1260_v10 }
  0x17   :  { %1130 = vmatpush3.bf16.msra.mxu0 %v1261_v13  ;;  %1244 = vmatpush3.bf16.msra.mxu1 %v1261_v13 }
  0x18   :  { %1131 = vmatprep.subr.bf16.mxu0 %v1262_v14  ;;  %1237 = vmatprep.subr.bf16.mxu1 %v1262_v14 }
  0x1b   :  { %1132 = vmatpush3.bf16.msra.mxu0 %v1263_v15  ;;  %1245 = vmatpush3.bf16.msra.mxu1 %v1263_v15 }
  0x1c   :  { %1133 = vmatprep.subr.bf16.mxu0 %v1264_v16  ;;  %1238 = vmatprep.subr.bf16.mxu1 %v1264_v16 }
  0x1f   :  { %1134 = vmatpush3.bf16.msra.mxu0 %v1265_v17  ;;  %1246 = vmatpush3.bf16.msra.mxu1 %v1265_v17 }
  0x22   :  { %437 = vmatmul.mubr.bf16.vlgmr.msra.gmra.mrb[0].mxu0 %v1266_v18  ;;  %501 = vmatmul.mubr.bf16.vlgmr.msra.gmra.mrb[0].mxu1 %v1269_v19 }
  0x23   :  { %444 = vmatprep.mubr.bf16.mxu0 %v1272_v20  ;;  %508 = vmatprep.mubr.bf16.mxu1 %v1274_v21 }
  0x24   :  { %8 = vsyncpa [#allocation4], 0  ;;  %v1276_v22 = vld [vmem:[%s1554_s0 + $0x10] ss:$8 sps:$4 sm:$0xff]   ;;  %v1278_v24 = vld [vmem:[%s1554_s0 + $0x24] ss:$8 sps:$4 sm:$0xff]  }
  0x25   :  { %v1277_v23 = vld [vmem:[%s1554_s0 + $0x90] ss:$8 sps:$4 sm:$0xff]   ;;  %v1280_v25 = vld [vmem:[%s1554_s0 + $0xa4] ss:$8 sps:$4 sm:$0xff]   ;;  %v1282_v26 = vld [vmem:[%s1554_s0 + $0x20] ss:$8 sps:$4 sm:$0xff]  }
  0x26   :  { %v1283_v27 = vld [vmem:[%s1554_s0 + $0xa0] ss:$8 sps:$4 sm:$0xff]   ;;  %v1284_v28 = vld [vmem:[%s1554_s0 + $0x34] ss:$8 sps:$4 sm:$0xff]   ;;  %v1288_v30 = vld [vmem:[%s1554_s0 + $0x30] ss:$8 sps:$4 sm:$0xff]  }
  0x27   :  { %v1286_v29 = vld [vmem:[%s1554_s0 + $0xb4] ss:$8 sps:$4 sm:$0xff]   ;;  %v1289_v31 = vld [vmem:[%s1554_s0 + $0xb0] ss:$8 sps:$4 sm:$0xff]   ;;  %v1290_v32 = vld [vmem:[%s1554_s0 + $0x44] ss:$8 sps:$4 sm:$0xff]  }
  0x28   :  { %v1292_v33 = vld [vmem:[%s1554_s0 + $0xc4] ss:$8 sps:$4 sm:$0xff]   ;;  %v1294_v34 = vld [vmem:[%s1554_s0 + $0x40] ss:$8 sps:$4 sm:$0xff]   ;;  %v1296_v36 = vld [vmem:[%s1554_s0 + $0x54] ss:$8 sps:$4 sm:$0xff]  }
  0x29   :  { %v1295_v35 = vld [vmem:[%s1554_s0 + $0xc0] ss:$8 sps:$4 sm:$0xff]   ;;  %v1298_v37 = vld [vmem:[%s1554_s0 + $0xd4] ss:$8 sps:$4 sm:$0xff]   ;;  %v1300_v38 = vld [vmem:[%s1554_s0 + $0x50] ss:$8 sps:$4 sm:$0xff]  }
  0x2a   :  { %445 = vmatmul.mubr.bf16.gmra.mrb[4].mxu0 %v1276_v22  ;;  %509 = vmatmul.mubr.bf16.gmra.mrb[4].mxu1 %v1277_v23  ;;  %v1301_v39 = vld [vmem:[%s1554_s0 + $0xd0] ss:$8 sps:$4 sm:$0xff]   ;;  %v1302_v40 = vld [vmem:[%s1554_s0 + $0x64] ss:$8 sps:$4 sm:$0xff]   ;;  %v1306_v42 = vld [vmem:[%s1554_s0 + $0x60] ss:$8 sps:$4 sm:$0xff]  }
  0x2b   :  { %452 = vmatprep.mubr.bf16.mxu0 %v1278_v24  ;;  %516 = vmatprep.mubr.bf16.mxu1 %v1280_v25  ;;  %v1304_v41 = vld [vmem:[%s1554_s0 + $0xe4] ss:$8 sps:$4 sm:$0xff]   ;;  %v1307_v43 = vld [vmem:[%s1554_s0 + $0xe0] ss:$8 sps:$4 sm:$0xff]   ;;  %v1308_v44 = vld [vmem:[%s1554_s0 + $0x74] ss:$8 sps:$4 sm:$0xff]  }
  0x2c   :  { %v1310_v45 = vld [vmem:[%s1554_s0 + $0xf4] ss:$8 sps:$4 sm:$0xff]   ;;  %v1312_v46 = vld [vmem:[%s1554_s0 + $0x70] ss:$8 sps:$4 sm:$0xff]   ;;  %v1508_v51 = vld [vmem:[%s1556_s2] ss:$0 sm:$0xff] }
  0x2d   :  { %v1313_v47 = vld [vmem:[%s1554_s0 + $0xf0] ss:$8 sps:$4 sm:$0xff]   ;;  %s1338_s0 = smov [#allocation3]  }
  0x2e   :  { %s900_s2 = sshll.u32 %s1338_s0, 4  ;;  %s901_s2 = int_to_ptr.vmem [resolvable:$true] %s900_s2 }
  0x2f   :  { %s1314_s27 = scalar_lea.vmem %s901_s2, 2048  ;;  %p1319_p1 = scmp.lt.s32.totalorder %s901_s2, %s901_s2 }
  0x30   :  { %p1315_p0 = scmp.ne.s32.totalorder %s901_s2, %s1314_s27  ;;  %p1320_p2 = scmp.lt.s32.totalorder %s1314_s27, %s1314_s27 }
  0x32   :  { %453 = vmatmul.mubr.bf16.gmra.mrb[8].mxu0 %v1282_v26  ;;  %517 = vmatmul.mubr.bf16.gmra.mrb[8].mxu1 %v1283_v27  ;;  %p1321_p3 = por %p1320_p2, %p1319_p1 }
  0x33   :  { %460 = vmatprep.mubr.bf16.mxu0 %v1284_v28  ;;  %524 = vmatprep.mubr.bf16.mxu1 %v1286_v29 }
  0x34   :  { %p1322_p4 = pnand %p1321_p3, %p1315_p0 }
  0x3a   :  { %461 = vmatmul.mubr.bf16.gmra.mrb[12].mxu0 %v1288_v30  ;;  %525 = vmatmul.mubr.bf16.gmra.mrb[12].mxu1 %v1289_v31 }
  0x3b   :  { %468 = vmatprep.mubr.bf16.mxu0 %v1290_v32  ;;  %532 = vmatprep.mubr.bf16.mxu1 %v1292_v33 }
  0x42   :  { %469 = vmatmul.mubr.bf16.gmra.mrb[16].mxu0 %v1294_v34  ;;  %533 = vmatmul.mubr.bf16.gmra.mrb[16].mxu1 %v1295_v35 }
  0x43   :  { %476 = vmatprep.mubr.bf16.mxu0 %v1296_v36  ;;  %540 = vmatprep.mubr.bf16.mxu1 %v1298_v37 }
  0x4a   :  { %477 = vmatmul.mubr.bf16.gmra.mrb[20].mxu0 %v1300_v38  ;;  %541 = vmatmul.mubr.bf16.gmra.mrb[20].mxu1 %v1301_v39 }
  0x4b   :  { %484 = vmatprep.mubr.bf16.mxu0 %v1302_v40  ;;  %548 = vmatprep.mubr.bf16.mxu1 %v1304_v41 }
  0x52   :  { %485 = vmatmul.mubr.bf16.gmra.mrb[24].mxu0 %v1306_v42  ;;  %549 = vmatmul.mubr.bf16.gmra.mrb[24].mxu1 %v1307_v43 }
  0x53   :  { %492 = vmatprep.mubr.bf16.mxu0 %v1308_v44  ;;  %556 = vmatprep.mubr.bf16.mxu1 %v1310_v45 }
  0x5a   :  { %493 = vmatmul.mubr.bf16.gmra.mrb[28].mxu0 %v1312_v46  ;;  %557 = vmatmul.mubr.bf16.gmra.mrb[28].mxu1 %v1313_v47 }
  0xf5   :  { %v1135_v48 = vpop.f32.mrb[0].mxu0  ;;  %v1183_v49 = vpop.f32.mrb[0].mxu1 }
  0xf6   :  { %v1136_v50 = vpop.f32.mrb[1].mxu0  ;;  %v1184_v52 = vpop.f32.mrb[1].mxu1 }
  0xf7   :  { %v1137_v53 = vadd.f32 %v1136_v50, %v1135_v48  ;;  %v1185_v54 = vadd.f32 %v1184_v52, %v1183_v49  ;;  %v1138_v55 = vpop.f32.mrb[2].mxu0  ;;  %v1186_v56 = vpop.f32.mrb[2].mxu1 }
  0xf8   :  { %v1139_v57 = vpop.f32.mrb[3].mxu0  ;;  %v1187_v58 = vpop.f32.mrb[3].mxu1 }
  0xf9   :  { %v671_v59 = vadd.f32 %v1137_v53, %v1508_v51  ;;  %v687_v60 = vadd.f32 %v1185_v54, %v1508_v51  ;;  %v1140_v61 = vadd.f32 %v1139_v57, %v1138_v55  ;;  %v1188_v62 = vadd.f32 %v1187_v58, %v1186_v56 }
  0xfb   :  { %v672_v63 = vadd.f32 %v1140_v61, %v1508_v51  ;;  %v688_v0 = vadd.f32 %v1188_v62, %v1508_v51  ;;  %v703_v1 = vmax.f32 %v671_v59, 0.0  ;;  %v719_v2 = vmax.f32 %v687_v60, 0.0 }
  0xfd   :  { %v704_v3 = vmax.f32 %v672_v63, 0.0  ;;  %v720_v4 = vmax.f32 %v688_v0, 0.0  ;;  %v1141_v5 = vpop.f32.mrb[4].mxu0  ;;  %v1189_v6 = vpop.f32.mrb[4].mxu1 }
  0xfe   :  { %v1142_v7 = vpop.f32.mrb[5].mxu0  ;;  %v1190_v8 = vpop.f32.mrb[5].mxu1 }
  0xff   :  { %v1027_v9 = vpack.c.bf16 %v704_v3, %v703_v1  ;;  %v1067_v10 = vpack.c.bf16 %v720_v4, %v719_v2  ;;  %v1143_v11 = vadd.f32 %v1142_v7, %v1141_v5  ;;  %v1191_v12 = vadd.f32 %v1190_v8, %v1189_v6  ;;  %v1144_v13 = vpop.f32.mrb[6].mxu0  ;;  %v1192_v14 = vpop.f32.mrb[6].mxu1 }
 0x100   :  { %v1145_v15 = vpop.f32.mrb[7].mxu0  ;;  %v1193_v16 = vpop.f32.mrb[7].mxu1 }
 0x101   :  { %1028 = vst [vmem:[#allocation3] sm:$0xff] %v1027_v9   ;;  %1111 = vst [vmem:[#allocation3 + $0x40] sm:$0xff] %v1067_v10   ;;  %v673_v17 = vadd.f32 %v1143_v11, %v1508_v51  ;;  %v689_v18 = vadd.f32 %v1191_v12, %v1508_v51  ;;  %v1146_v19 = vadd.f32 %v1145_v15, %v1144_v13 }
 0x102   :  { %v1194_v20 = vadd.f32 %v1193_v16, %v1192_v14 }
 0x103   :  { %v674_v21 = vadd.f32 %v1146_v19, %v1508_v51  ;;  %v705_v23 = vmax.f32 %v673_v17, 0.0  ;;  %v721_v24 = vmax.f32 %v689_v18, 0.0 }
 0x104   :  { %v690_v22 = vadd.f32 %v1194_v20, %v1508_v51 }
 0x105   :  { %v706_v25 = vmax.f32 %v674_v21, 0.0  ;;  %v1147_v27 = vpop.f32.mrb[8].mxu0  ;;  %v1195_v28 = vpop.f32.mrb[8].mxu1 }
 0x106   :  { %v722_v26 = vmax.f32 %v690_v22, 0.0  ;;  %v1148_v29 = vpop.f32.mrb[9].mxu0  ;;  %v1196_v30 = vpop.f32.mrb[9].mxu1 }
 0x107   :  { %v1032_v31 = vpack.c.bf16 %v706_v25, %v705_v23  ;;  %v1149_v33 = vadd.f32 %v1148_v29, %v1147_v27  ;;  %v1197_v34 = vadd.f32 %v1196_v30, %v1195_v28  ;;  %v1150_v35 = vpop.f32.mrb[10].mxu0  ;;  %v1198_v36 = vpop.f32.mrb[10].mxu1 }
 0x108   :  { %v1072_v32 = vpack.c.bf16 %v722_v26, %v721_v24  ;;  %v1151_v37 = vpop.f32.mrb[11].mxu0  ;;  %v1199_v38 = vpop.f32.mrb[11].mxu1 }
 0x109   :  { %1104 = vst [vmem:[#allocation3 + $0x8] sm:$0xff] %v1032_v31   ;;  %v675_v39 = vadd.f32 %v1149_v33, %v1508_v51  ;;  %v691_v40 = vadd.f32 %v1197_v34, %v1508_v51  ;;  %v1152_v41 = vadd.f32 %v1151_v37, %v1150_v35  ;;  %v1200_v42 = vadd.f32 %v1199_v38, %v1198_v36 }
 0x10a   :  { %1112 = vst [vmem:[#allocation3 + $0x48] sm:$0xff] %v1072_v32  }
 0x10b   :  { %v676_v43 = vadd.f32 %v1152_v41, %v1508_v51  ;;  %v692_v44 = vadd.f32 %v1200_v42, %v1508_v51  ;;  %v707_v45 = vmax.f32 %v675_v39, 0.0  ;;  %v723_v46 = vmax.f32 %v691_v40, 0.0 }
 0x10d   :  { %v708_v47 = vmax.f32 %v676_v43, 0.0  ;;  %v724_v48 = vmax.f32 %v692_v44, 0.0  ;;  %v1153_v49 = vpop.f32.mrb[12].mxu0  ;;  %v1201_v50 = vpop.f32.mrb[12].mxu1 }
 0x10e   :  { %v1154_v52 = vpop.f32.mrb[13].mxu0  ;;  %v1202_v53 = vpop.f32.mrb[13].mxu1 }
 0x10f   :  { %v1037_v54 = vpack.c.bf16 %v708_v47, %v707_v45  ;;  %v1077_v55 = vpack.c.bf16 %v724_v48, %v723_v46  ;;  %v1155_v56 = vadd.f32 %v1154_v52, %v1153_v49  ;;  %v1203_v57 = vadd.f32 %v1202_v53, %v1201_v50  ;;  %v1156_v58 = vpop.f32.mrb[14].mxu0  ;;  %v1204_v59 = vpop.f32.mrb[14].mxu1 }
 0x110   :  { %v1157_v60 = vpop.f32.mrb[15].mxu0  ;;  %v1205_v61 = vpop.f32.mrb[15].mxu1 }
 0x111   :  { %1105 = vst [vmem:[#allocation3 + $0x10] sm:$0xff] %v1037_v54   ;;  %1113 = vst [vmem:[#allocation3 + $0x50] sm:$0xff] %v1077_v55   ;;  %v677_v62 = vadd.f32 %v1155_v56, %v1508_v51  ;;  %v693_v63 = vadd.f32 %v1203_v57, %v1508_v51  ;;  %v1158_v0 = vadd.f32 %v1157_v60, %v1156_v58 }
 0x112   :  { %v1206_v1 = vadd.f32 %v1205_v61, %v1204_v59 }
 0x113   :  { %v678_v2 = vadd.f32 %v1158_v0, %v1508_v51  ;;  %v709_v4 = vmax.f32 %v677_v62, 0.0  ;;  %v725_v5 = vmax.f32 %v693_v63, 0.0 }
 0x114   :  { %v694_v3 = vadd.f32 %v1206_v1, %v1508_v51 }
 0x115   :  { %v710_v6 = vmax.f32 %v678_v2, 0.0  ;;  %v1159_v8 = vpop.f32.mrb[16].mxu0  ;;  %v1207_v9 = vpop.f32.mrb[16].mxu1 }
 0x116   :  { %v726_v7 = vmax.f32 %v694_v3, 0.0  ;;  %v1160_v10 = vpop.f32.mrb[17].mxu0  ;;  %v1208_v11 = vpop.f32.mrb[17].mxu1 }
 0x117   :  { %v1042_v12 = vpack.c.bf16 %v710_v6, %v709_v4  ;;  %v1161_v14 = vadd.f32 %v1160_v10, %v1159_v8  ;;  %v1209_v15 = vadd.f32 %v1208_v11, %v1207_v9  ;;  %v1162_v16 = vpop.f32.mrb[18].mxu0  ;;  %v1210_v17 = vpop.f32.mrb[18].mxu1 }
 0x118   :  { %v1082_v13 = vpack.c.bf16 %v726_v7, %v725_v5  ;;  %v1163_v18 = vpop.f32.mrb[19].mxu0  ;;  %v1211_v19 = vpop.f32.mrb[19].mxu1 }
 0x119   :  { %1106 = vst [vmem:[#allocation3 + $0x18] sm:$0xff] %v1042_v12   ;;  %v679_v20 = vadd.f32 %v1161_v14, %v1508_v51  ;;  %v695_v21 = vadd.f32 %v1209_v15, %v1508_v51  ;;  %v1164_v22 = vadd.f32 %v1163_v18, %v1162_v16  ;;  %v1212_v23 = vadd.f32 %v1211_v19, %v1210_v17 }
 0x11a   :  { %1114 = vst [vmem:[#allocation3 + $0x58] sm:$0xff] %v1082_v13  }
 0x11b   :  { %v680_v24 = vadd.f32 %v1164_v22, %v1508_v51  ;;  %v696_v25 = vadd.f32 %v1212_v23, %v1508_v51  ;;  %v711_v26 = vmax.f32 %v679_v20, 0.0  ;;  %v727_v27 = vmax.f32 %v695_v21, 0.0 }
 0x11d   :  { %v712_v28 = vmax.f32 %v680_v24, 0.0  ;;  %v728_v29 = vmax.f32 %v696_v25, 0.0  ;;  %v1165_v30 = vpop.f32.mrb[20].mxu0  ;;  %v1213_v31 = vpop.f32.mrb[20].mxu1 }
 0x11e   :  { %v1166_v32 = vpop.f32.mrb[21].mxu0  ;;  %v1214_v33 = vpop.f32.mrb[21].mxu1 }
 0x11f   :  { %v1047_v34 = vpack.c.bf16 %v712_v28, %v711_v26  ;;  %v1087_v35 = vpack.c.bf16 %v728_v29, %v727_v27  ;;  %v1167_v36 = vadd.f32 %v1166_v32, %v1165_v30  ;;  %v1215_v37 = vadd.f32 %v1214_v33, %v1213_v31  ;;  %v1168_v38 = vpop.f32.mrb[22].mxu0  ;;  %v1216_v39 = vpop.f32.mrb[22].mxu1 }
 0x120   :  { %v1169_v40 = vpop.f32.mrb[23].mxu0  ;;  %v1217_v41 = vpop.f32.mrb[23].mxu1 }
 0x121   :  { %1107 = vst [vmem:[#allocation3 + $0x20] sm:$0xff] %v1047_v34   ;;  %1115 = vst [vmem:[#allocation3 + $0x60] sm:$0xff] %v1087_v35   ;;  %v681_v42 = vadd.f32 %v1167_v36, %v1508_v51  ;;  %v697_v43 = vadd.f32 %v1215_v37, %v1508_v51  ;;  %v1170_v44 = vadd.f32 %v1169_v40, %v1168_v38 }
 0x122   :  { %v1218_v45 = vadd.f32 %v1217_v41, %v1216_v39 }
 0x123   :  { %v682_v46 = vadd.f32 %v1170_v44, %v1508_v51  ;;  %v713_v48 = vmax.f32 %v681_v42, 0.0  ;;  %v729_v49 = vmax.f32 %v697_v43, 0.0 }
 0x124   :  { %v698_v47 = vadd.f32 %v1218_v45, %v1508_v51 }
 0x125   :  { %v714_v50 = vmax.f32 %v682_v46, 0.0  ;;  %v1171_v53 = vpop.f32.mrb[24].mxu0  ;;  %v1219_v54 = vpop.f32.mrb[24].mxu1 }
 0x126   :  { %v730_v52 = vmax.f32 %v698_v47, 0.0  ;;  %v1172_v55 = vpop.f32.mrb[25].mxu0  ;;  %v1220_v56 = vpop.f32.mrb[25].mxu1 }
 0x127   :  { %v1052_v57 = vpack.c.bf16 %v714_v50, %v713_v48  ;;  %v1173_v59 = vadd.f32 %v1172_v55, %v1171_v53  ;;  %v1221_v60 = vadd.f32 %v1220_v56, %v1219_v54  ;;  %v1174_v61 = vpop.f32.mrb[26].mxu0  ;;  %v1222_v62 = vpop.f32.mrb[26].mxu1 }
 0x128   :  { %v1092_v58 = vpack.c.bf16 %v730_v52, %v729_v49  ;;  %v1175_v63 = vpop.f32.mrb[27].mxu0  ;;  %v1223_v0 = vpop.f32.mrb[27].mxu1 }
 0x129   :  { %1108 = vst [vmem:[#allocation3 + $0x28] sm:$0xff] %v1052_v57   ;;  %v683_v1 = vadd.f32 %v1173_v59, %v1508_v51  ;;  %v699_v2 = vadd.f32 %v1221_v60, %v1508_v51  ;;  %v1176_v3 = vadd.f32 %v1175_v63, %v1174_v61  ;;  %v1224_v4 = vadd.f32 %v1223_v0, %v1222_v62 }
 0x12a   :  { %1116 = vst [vmem:[#allocation3 + $0x68] sm:$0xff] %v1092_v58  }
 0x12b   :  { %v684_v5 = vadd.f32 %v1176_v3, %v1508_v51  ;;  %v700_v6 = vadd.f32 %v1224_v4, %v1508_v51  ;;  %v715_v7 = vmax.f32 %v683_v1, 0.0  ;;  %v731_v8 = vmax.f32 %v699_v2, 0.0 }
 0x12d   :  { %v716_v9 = vmax.f32 %v684_v5, 0.0  ;;  %v732_v10 = vmax.f32 %v700_v6, 0.0  ;;  %v1177_v11 = vpop.f32.mrb[28].mxu0  ;;  %v1225_v12 = vpop.f32.mrb[28].mxu1 }
 0x12e   :  { %v1178_v13 = vpop.f32.mrb[29].mxu0  ;;  %v1226_v14 = vpop.f32.mrb[29].mxu1 }
 0x12f   :  { %v1057_v15 = vpack.c.bf16 %v716_v9, %v715_v7  ;;  %v1097_v16 = vpack.c.bf16 %v732_v10, %v731_v8  ;;  %v1179_v17 = vadd.f32 %v1178_v13, %v1177_v11  ;;  %v1227_v18 = vadd.f32 %v1226_v14, %v1225_v12  ;;  %v1180_v19 = vpop.f32.mrb[30].mxu0  ;;  %v1228_v20 = vpop.f32.mrb[30].mxu1 }
 0x130   :  { %v1181_v21 = vpop.f32.mrb[31].mxu0  ;;  %v1229_v22 = vpop.f32.mrb[31].mxu1 }
 0x131   :  { %1109 = vst [vmem:[#allocation3 + $0x30] sm:$0xff] %v1057_v15   ;;  %1117 = vst [vmem:[#allocation3 + $0x70] sm:$0xff] %v1097_v16   ;;  %v685_v23 = vadd.f32 %v1179_v17, %v1508_v51  ;;  %v701_v24 = vadd.f32 %v1227_v18, %v1508_v51  ;;  %v1182_v25 = vadd.f32 %v1181_v21, %v1180_v19 }
 0x132   :  { %v1230_v26 = vadd.f32 %v1229_v22, %v1228_v20 }
 0x133   :  { %v686_v27 = vadd.f32 %v1182_v25, %v1508_v51  ;;  %v717_v29 = vmax.f32 %v685_v23, 0.0  ;;  %v733_v30 = vmax.f32 %v701_v24, 0.0 }
 0x134   :  { %v702_v28 = vadd.f32 %v1230_v26, %v1508_v51 }
 0x135   :  { %v718_v31 = vmax.f32 %v686_v27, 0.0 }
 0x136   :  { %v734_v32 = vmax.f32 %v702_v28, 0.0 }
 0x137   :  { %v1062_v33 = vpack.c.bf16 %v718_v31, %v717_v29 }
 0x138   :  { %v1102_v34 = vpack.c.bf16 %v734_v32, %v733_v30 }
 0x139   :  { %1110 = vst [vmem:[#allocation3 + $0x38] sm:$0xff] %v1062_v33  }
 0x13a   :  { %1118 = vst [vmem:[#allocation3 + $0x78] sm:$0xff] %v1102_v34  }
 0x13b   :  { %1325 = shalt.err (!%p1322_p4)
}
 0x13c   :  { %s1326_s29 = scalar_lea.hbm %s1557_s3, 2048 }
 0x13d   :  { %p1327_p5 = scmp.ne.s32.totalorder %s1557_s3, %s1326_s29  ;;  %p1330_p6 = scmp.lt.u32.totalorder %s1326_s29, %s1557_s3 }
 0x13f   :  { %p1332_p7 = pnand %p1330_p6, %p1327_p5 }
 0x141   :  { %1335 = shalt.err (!%p1332_p7)
}
 0x142   :  { %s1339_s7 = smov 64   ;;  %s1340_s8 = smov 4  }
 0x143   :  { %906 = dma.vmem_to_hbm [thread:$0]  %s901_s2, 2048, %s1557_s3, [#allocation4], %s1339_s7, %s1339_s7, %s1340_s8  }
 0x144   :  { %1336 = dma.done.wait [#allocation4], 2048  }
 0x145   :  { %1337 = vsyncadd [#allocation4], 4294965248 }
 0x146   :  { %910 = vsyncpa [#allocation4], 1 }

</bundles_post_ra>
